<compile_context>
chip_gen: v7x
topology: tpu7x:2x2x1
jax: 0.10.0
libtpu: 0.0.40
codegen_flags: <defaults>
</compile_context>

<pallas_src>
import functools

import jax
import jax.numpy as jnp
from jax import lax
from jax.experimental import pallas as pl
from jax.experimental.pallas import tpu as pltpu

_LANES = 128
_SUBLANES = 8
_NEG_BIG = -1e30           # padded-label bias; exp() underflows to 0 (f32 only!)
_RESIDENT_WEIGHT_BYTES = 12 * 1024 * 1024   # fall back to K-streaming above this


def _round_up(n, m):
    return ((n + m - 1) // m) * m


def _probe_kernel(x_ref, w_ref, b_ref, o_ref, acc_ref, *, td, weight_resident):
    """Processes one (TB, TD) x-tile against the (Dp, Lp) weight."""
    k = pl.program_id(1)

    @pl.when(k == 0)
    def _init():
        # Accumulator starts at the bias.  Padded label columns hold -1e30 so
        # they contribute exp() == 0 to the softmax.  Kept in f32 always (a
        # bf16 bias/acc path would overflow -1e30 to -inf and NaN the softmax).
        acc_ref[...] = jnp.broadcast_to(b_ref[...], acc_ref.shape)

    if weight_resident:
        # Full padded weight lives in VMEM for the whole grid; slice the k-th
        # (TD, Lp) chunk in-kernel instead of re-streaming it from HBM at
        # every batch-tile boundary.
        start = pl.multiple_of(k * td, _LANES)
        w_chunk = w_ref[pl.ds(start, td), :]
    else:
        w_chunk = w_ref[...]

    # (TB, TD) @ (TD, Lp) -> (TB, Lp) on the MXU, f32 accumulation.
    acc_ref[...] += jnp.dot(x_ref[...], w_chunk,
                            preferred_element_type=jnp.float32)

    @pl.when(k == pl.num_programs(1) - 1)
    def _finalize():
        logits = acc_ref[...]
        # Numerically stable softmax along the (padded) label axis.
        m = jnp.max(logits, axis=1, keepdims=True)
        e = jnp.exp(logits - m)
        denom = jnp.sum(e, axis=1, keepdims=True)
        # Exact divide (one per batch tile) -> rows sum to 1 to f32 precision.
        o_ref[...] = (e / denom).astype(o_ref.dtype)


def make_classification_probe(weight, bias, *, block_b=512, block_d=2048,
                              compute_dtype=jnp.float32):
    """Pads the nn.Linear params once and returns forward(x) -> probabilities.

    weight: (num_labs, in_dim) f32 (PyTorch nn.Linear layout), bias: (num_labs,).
    """
    L, D = weight.shape
    assert bias.shape == (L,), (bias.shape, L)
    compute_dtype = jnp.dtype(compute_dtype)
    sub_mult = 16 if compute_dtype == jnp.dtype(jnp.bfloat16) else _SUBLANES

    # ---- label axis: one lane-dense 128-wide tile (exactly one MXU pass).
    Lp = _round_up(max(L, 1), _LANES)

    # ---- feature (reduction) axis: pad to a multiple of 128, then split into
    # nk equal 128-multiple chunks no wider than block_d (minimal padding).
    Dp0 = _round_up(D, _LANES)
    nk = pl.cdiv(Dp0, block_d)
    TD = _round_up(pl.cdiv(Dp0, nk), _LANES)
    Dp = nk * TD

    # ---- padded params, built ONCE and captured by the closure.
    # Weight stored transposed (Dp, Lp): plain (M,K)x(K,N) dot, lane dim = Lp.
    w_p = (jnp.zeros((Dp, Lp), compute_dtype)
           .at[:D, :L].set(weight.T.astype(compute_dtype)))
    b_p = (jnp.full((1, Lp), _NEG_BIG, jnp.float32)
           .at[0, :L].set(bias.astype(jnp.float32)))

    weight_resident = Dp * Lp * compute_dtype.itemsize <= _RESIDENT_WEIGHT_BYTES
    kernel = functools.partial(_probe_kernel, td=TD,
                               weight_resident=weight_resident)
    if weight_resident:
        w_spec = pl.BlockSpec((Dp, Lp), lambda i, k: (0, 0))   # VMEM-resident
    else:
        w_spec = pl.BlockSpec((TD, Lp), lambda i, k: (k, 0))   # streamed over K

    def forward(x):
        B, Dx = x.shape
        assert Dx == D, (Dx, D)
        out_dtype = x.dtype

        # ---- batch axis: divisor-based tiling minimizes padding (B=300 ->
        # Bp=304, not 512); force >=2 tiles when possible so the "parallel"
        # axis shards across both TensorCores on v7x.
        nb = pl.cdiv(B, block_b)
        if B >= 2 * sub_mult:
            nb = max(nb, 2)
        TB = _round_up(pl.cdiv(B, nb), sub_mult)
        nb = pl.cdiv(B, TB)
        Bp = nb * TB

        x_c = x.astype(compute_dtype)
        if (Bp, Dp) != (B, D):
            x_p = jnp.zeros((Bp, Dp), compute_dtype).at[:B, :D].set(x_c)
        else:
            x_p = x_c

        out = pl.pallas_call(
            kernel,
            out_shape=jax.ShapeDtypeStruct((Bp, Lp), out_dtype),
            grid_spec=pltpu.PrefetchScalarGridSpec(
                num_scalar_prefetch=0,
                grid=(nb, nk),                                    # reduction last
                in_specs=[
                    pl.BlockSpec((TB, TD), lambda i, k: (i, k)),  # x (pipelined)
                    w_spec,                                       # weight
                    pl.BlockSpec((1, Lp), lambda i, k: (0, 0)),   # bias
                ],
                out_specs=pl.BlockSpec((TB, Lp), lambda i, k: (i, 0)),
                scratch_shapes=[pltpu.VMEM((TB, Lp), jnp.float32)],
            ),
            compiler_params=pltpu.CompilerParams(
                dimension_semantics=("parallel", "arbitrary"),
                vmem_limit_bytes=32 * 1024 * 1024,
            ),
        )(x_p, w_p, b_p)

        # Drop batch / label padding.
        return out[:B, :L]

    return forward


def classification_probe_forward(x, weight, bias, **kwargs):
    """One-shot convenience wrapper (pads params per call; prefer
    make_classification_probe in a loop so padded params are cached)."""
    return make_classification_probe(weight, bias, **kwargs)(x)


def _reference(x, weight, bias):
    logits = jnp.dot(x, weight.T, precision=lax.Precision.HIGHEST) + bias
    return jax.nn.softmax(logits, axis=1)


# TODO(synk): compute_scores / class_accuracies / accuracy bookkeeping are
# host-side sklearn/numpy metrics, not part of the forward pass -> not ported.

if __name__ == "__main__":
    key = jax.random.PRNGKey(0)

    # --- tiny demo shapes implied by the module (a linear classification probe).
    # NOTE: at this size plain XLA would beat a standalone pallas_call; the
    # kernel pays off once batch tiling amortizes DMA / MXU setup.
    batch, in_dim, num_labs = 8, 32, 8
    kx, kw, kb, kx2, kw2, kb2 = jax.random.split(key, 6)

    bound = 1.0 / jnp.sqrt(jnp.float32(in_dim))
    weight = jax.random.uniform(kw, (num_labs, in_dim), jnp.float32,
                                minval=-bound, maxval=bound)
    bias = jax.random.uniform(kb, (num_labs,), jnp.float32,
                              minval=-bound, maxval=bound)
    x = jax.random.normal(kx, (batch, in_dim), jnp.float32)

    out = classification_probe_forward(x, weight, bias)
    out = jax.block_until_ready(out)
    ref = _reference(x, weight, bias)
    assert out.shape == (batch, num_labs)
    assert jnp.allclose(out, ref, atol=5e-3, rtol=5e-3), "mismatch vs reference"
    assert jnp.allclose(out.sum(axis=1), 1.0, atol=1e-4), "rows not normalized"

    # --- larger, non-aligned shapes: exercises divisor-based batch tiling
    # (300 -> 2 tiles of 152), 128-multiple D padding (1300 -> 1408, single K
    # step), label-axis padding, and the VMEM-resident weight path.
    B2, D2, L2 = 300, 1300, 10
    bound2 = 1.0 / jnp.sqrt(jnp.float32(D2))
    weight2 = jax.random.uniform(kw2, (L2, D2), jnp.float32,
                                 minval=-bound2, maxval=bound2)
    bias2 = jax.random.uniform(kb2, (L2,), jnp.float32,
                               minval=-bound2, maxval=bound2)
    x2 = jax.random.normal(kx2, (B2, D2), jnp.float32)

    probe2 = make_classification_probe(weight2, bias2)   # padded params cached
    out2 = jax.block_until_ready(probe2(x2))
    ref2 = _reference(x2, weight2, bias2)
    assert out2.shape == (B2, L2)
    assert jnp.allclose(out2, ref2, atol=5e-3, rtol=5e-3), "mismatch (tiled case)"
    assert jnp.allclose(out2.sum(axis=1), 1.0, atol=1e-4), "rows not normalized"

    # --- optional bf16 streaming path (halves the dominant HBM traffic); bias,
    # accumulator and softmax remain f32, so accuracy loss is only in the matmul.
    probe2_bf16 = make_classification_probe(weight2, bias2,
                                            compute_dtype=jnp.bfloat16)
    out2b = jax.block_until_ready(probe2_bf16(x2))
    assert out2b.shape == (B2, L2)
    assert jnp.allclose(out2b, ref2, atol=5e-2, rtol=5e-2), "mismatch (bf16 case)"
    assert jnp.allclose(out2b.sum(axis=1), 1.0, atol=1e-3), "rows not normalized"

    print("KERNEL_OK")
</pallas_src>

<mosaic_0001>
module attributes {stable_mosaic.version = 11 : i64} {
  func.func @_probe_kernel(%arg0: i32, %arg1: i32, %arg2: memref<8x128xf32, #tpu.memory_space<vmem>>, %arg3: memref<128x128xf32, #tpu.memory_space<vmem>>, %arg4: memref<1x128xf32, #tpu.memory_space<vmem>>, %arg5: memref<8x128xf32, #tpu.memory_space<vmem>>, %arg6: memref<8x128xf32, #tpu.memory_space<vmem>>) attributes {dimension_semantics = [#tpu.dimension_semantics<parallel>, #tpu.dimension_semantics<arbitrary>], iteration_bounds = array<i64: 1, 1>, scalar_prefetch = 0 : i64, scratch_operands = 1 : i64, tpu.core_type = #tpu.core_type<tc>, window_params = [{transform_indices = @transform_0, window_bounds = array<i64: 8, 128>}, {pipeline_mode = #tpu.pipeline_mode<synchronous>, transform_indices = @transform_1, window_bounds = array<i64: 128, 128>}, {pipeline_mode = #tpu.pipeline_mode<synchronous>, transform_indices = @transform_2, window_bounds = array<i64: 1, 128>}, {transform_indices = @transform_3, window_bounds = array<i64: 8, 128>}]} {
    %c0_i32 = arith.constant 0 : i32
    %0 = arith.cmpi eq, %arg1, %c0_i32 : i32
    %1 = arith.extui %0 : i1 to i32
    %c0_i32_0 = arith.constant 0 : i32
    %2 = arith.cmpi ne, %1, %c0_i32_0 : i32
    scf.if %2 {
      %c0_9 = arith.constant 0 : index
      %c0_10 = arith.constant 0 : index
      %15 = vector.load %arg4[%c0_9, %c0_10] : memref<1x128xf32, #tpu.memory_space<vmem>>, vector<1x128xf32>
      %16 = vector.shape_cast %15 : vector<1x128xf32> to vector<1x128xf32>
      %17 = vector.broadcast %16 : vector<1x128xf32> to vector<8x128xf32>
      %c0_11 = arith.constant 0 : index
      %c0_12 = arith.constant 0 : index
      %18 = vector.load %arg6[%c0_11, %c0_12] : memref<8x128xf32, #tpu.memory_space<vmem>>, vector<8x128xf32>
      tpu.vector_store %arg6[%c0_11, %c0_12], %17 {strides = array<i32>} : memref<8x128xf32, #tpu.memory_space<vmem>>, vector<8x128xf32>,
    } else {
    }
    %c128_i32 = arith.constant 128 : i32
    %3 = arith.muli %arg1, %c128_i32 : i32
    %4 = tpu.assume_multiple %3, 128 : i32
    %5 = arith.index_cast %4 : i32 to index
    %c0 = arith.constant 0 : index
    %6 = vector.load %arg3[%5, %c0] : memref<128x128xf32, #tpu.memory_space<vmem>>, vector<128x128xf32>
    %c0_1 = arith.constant 0 : index
    %c0_2 = arith.constant 0 : index
    %7 = vector.load %arg6[%c0_1, %c0_2] : memref<8x128xf32, #tpu.memory_space<vmem>>, vector<8x128xf32>
    %c0_3 = arith.constant 0 : index
    %c0_4 = arith.constant 0 : index
    %8 = vector.load %arg2[%c0_3, %c0_4] : memref<8x128xf32, #tpu.memory_space<vmem>>, vector<8x128xf32>
    %cst = arith.constant dense<0.000000e+00> : vector<8x128xf32>
    %9 = tpu.matmul %8, %6, %cst {dimension_numbers = #tpu.dot_dimension_numbers<[1], [0], [0], [1], [0, 0, 1, 1], [], []>} : vector<8x128xf32>, vector<128x128xf32>, vector<8x128xf32> -> vector<8x128xf32>
    %10 = arith.addf %7, %9 : vector<8x128xf32>
    %c0_5 = arith.constant 0 : index
    %c0_6 = arith.constant 0 : index
    %11 = vector.load %arg6[%c0_5, %c0_6] : memref<8x128xf32, #tpu.memory_space<vmem>>, vector<8x128xf32>
    tpu.vector_store %arg6[%c0_5, %c0_6], %10 {strides = array<i32>} : memref<8x128xf32, #tpu.memory_space<vmem>>, vector<8x128xf32>,
    %c0_i32_7 = arith.constant 0 : i32
    %12 = arith.cmpi eq, %arg1, %c0_i32_7 : i32
    %13 = arith.extui %12 : i1 to i32
    %c0_i32_8 = arith.constant 0 : i32
    %14 = arith.cmpi ne, %13, %c0_i32_8 : i32
    scf.if %14 {
      %c0_9 = arith.constant 0 : index
      %c0_10 = arith.constant 0 : index
      %15 = vector.load %arg6[%c0_9, %c0_10] : memref<8x128xf32, #tpu.memory_space<vmem>>, vector<8x128xf32>
      %cst_11 = arith.constant dense<0xFF800000> : vector<8xf32>
      %16 = vector.multi_reduction <maximumf>, %15, %cst_11 [1] : vector<8x128xf32> to vector<8xf32>
      %17 = vector.shape_cast %16 : vector<8xf32> to vector<8x1xf32>
      %18 = vector.broadcast %17 : vector<8x1xf32> to vector<8x128xf32>
      %19 = arith.subf %15, %18 : vector<8x128xf32>
      %20 = math.exp %19 : vector<8x128xf32>
      %cst_12 = arith.constant dense<0.000000e+00> : vector<8xf32>
      %21 = vector.multi_reduction <add>, %20, %cst_12 [1] : vector<8x128xf32> to vector<8xf32>
      %22 = vector.shape_cast %21 : vector<8xf32> to vector<8x1xf32>
      %23 = vector.broadcast %22 : vector<8x1xf32> to vector<8x128xf32>
      %24 = arith.divf %20, %23 : vector<8x128xf32>
      %c0_13 = arith.constant 0 : index
      %c0_14 = arith.constant 0 : index
      %25 = vector.load %arg5[%c0_13, %c0_14] : memref<8x128xf32, #tpu.memory_space<vmem>>, vector<8x128xf32>
      tpu.vector_store %arg5[%c0_13, %c0_14], %24 {strides = array<i32>} : memref<8x128xf32, #tpu.memory_space<vmem>>, vector<8x128xf32>,
    } else {
    }
    return
  }
  func.func @transform_0(%arg0: i32, %arg1: i32) -> (i32, i32) {
    %c0_i32 = arith.constant 0 : i32
    return %arg0, %arg1 : i32, i32
  }
  func.func @transform_1(%arg0: i32, %arg1: i32) -> (i32, i32) {
    %c0_i32 = arith.constant 0 : i32
    %c0_i32_0 = arith.constant 0 : i32
    %c0_i32_1 = arith.constant 0 : i32
    return %c0_i32, %c0_i32_0 : i32, i32
  }
  func.func @transform_2(%arg0: i32, %arg1: i32) -> (i32, i32) {
    %c0_i32 = arith.constant 0 : i32
    %c0_i32_0 = arith.constant 0 : i32
    %c0_i32_1 = arith.constant 0 : i32
    return %c0_i32, %c0_i32_0 : i32, i32
  }
  func.func @transform_3(%arg0: i32, %arg1: i32) -> (i32, i32) {
    %c0_i32 = arith.constant 0 : i32
    %c0_i32_0 = arith.constant 0 : i32
    return %arg0, %c0_i32 : i32, i32
  }
}

</mosaic_0001>

<bundles_post_ra>
// kernel: tpu_custom_call.1
= control target key start
LH: loop header
LB: loop body
LE: loop exit
PB: predicated region body
PF: predicated region fallthrough
CT: control target
= control target key end

     0   :  { %8 = vsyncpa [#allocation4], 0  ;;  %s410_s0 = inlined_call_operand.hbm [shape: f32[8,128], index: 0, kind: input, shape index: {}]   ;;  %s411_s1 = inlined_call_operand.hbm [shape: f32[128,128], index: 1, kind: input, shape index: {}]   ;;  %s412_s2 = inlined_call_operand.vmem [shape: f32[1,128], index: 2, kind: input, shape index: {}]   ;;  %s413_s3 = inlined_call_operand.hbm [shape: f32[8,128], index: 3, kind: output, shape index: {}]  }
   0x1   :  { %9 = vsyncpa [#allocation7], 0 }
   0x2   :  { %10 = vsyncpa [#allocation5], 0  ;;  %s336_s12 = smov [#allocation3]   ;;  %s337_s14 = smov [#allocation6]  }
   0x3   :  { %s17_s13 = sshll.u32 %s336_s12, 4  ;;  %s26_s15 = sshll.u32 %s337_s14, 4  ;;  %s18_s13 = int_to_ptr.vmem [resolvable:$true] %s17_s13  ;;  %s364_s15 = int_to_ptr.vmem [resolvable:$true] %s26_s15 }
   0x4   :  { %s264_s18 = scalar_lea.hbm %s410_s0, 128 }
   0x5   :  { %p265_p0 = scmp.ne.s32.totalorder %s410_s0, %s264_s18  ;;  %p268_p1 = scmp.lt.u32.totalorder %s264_s18, %s410_s0 }
   0x7   :  { %p270_p2 = pnand %p268_p1, %p265_p0 }
   0x9   :  { %273 = shalt.err (!%p270_p2)
}
   0xa   :  { %s274_s23 = scalar_lea.vmem %s18_s13, 128  ;;  %p279_p4 = scmp.lt.s32.totalorder %s18_s13, %s18_s13 }
   0xb   :  { %p275_p3 = scmp.ne.s32.totalorder %s18_s13, %s274_s23  ;;  %p280_p5 = scmp.lt.s32.totalorder %s274_s23, %s274_s23 }
   0xd   :  { %p281_p6 = por %p280_p5, %p279_p4 }
   0xf   :  { %p282_p7 = pnand %p281_p6, %p275_p3 }
  0x11   :  { %285 = shalt.err (!%p282_p7)
}
  0x12   :  { %20 = dma.hbm_to_vmem [thread:$0]  %s410_s0, 128, %s18_s13, [#allocation4]  }
  0x13   :  { %s286_s28 = scalar_lea.hbm %s411_s1, 2048 }
  0x14   :  { %p287_p8 = scmp.ne.s32.totalorder %s411_s1, %s286_s28  ;;  %p290_p9 = scmp.lt.u32.totalorder %s286_s28, %s411_s1 }
  0x16   :  { %p292_p10 = pnand %p290_p9, %p287_p8 }
  0x18   :  { %295 = shalt.err (!%p292_p10)
}
  0x19   :  { %s296_s6 = scalar_lea.vmem %s364_s15, 2048  ;;  %p301_p12 = scmp.lt.s32.totalorder %s364_s15, %s364_s15 }
  0x1a   :  { %p297_p11 = scmp.ne.s32.totalorder %s364_s15, %s296_s6  ;;  %p302_p13 = scmp.lt.s32.totalorder %s296_s6, %s296_s6 }
  0x1c   :  { %p303_p0 = por %p302_p13, %p301_p12 }
  0x1e   :  { %p304_p1 = pnand %p303_p0, %p297_p11 }
  0x20   :  { %307 = shalt.err (!%p304_p1)
}
  0x21   :  { %s338_s0 = smov 128   ;;  %s339_s7 = smov 8  }
  0x22   :  { %32 = dma.hbm_to_vmem [thread:$0]  %s411_s1, 2048, %s364_s15, [#allocation7], %s338_s0, %s338_s0, %s339_s7  }
  0x23   :  { %330 = dma.done.wait [#allocation4], 128  }
  0x24   :  { %331 = vsyncadd [#allocation4], 4294967168 }
  0x25   :  { %332 = dma.done.wait [#allocation7], 2048  }
  0x26   :  { %333 = vsyncadd [#allocation7], 4294965248  ;;  %v340_v0 = vmov 0.0|0.0   ;;  %vm341_vm0 = vmmov 0   ;;  %v342_v1 = vmov 0.0   ;;  %v55_v2 = vld [vmem:[#allocation6] sm:$0xff] }
  0x27   :  { %228 = vmatprep.subr.bf16.mxu0 %v340_v0  ;;  %225 = vmatprep.mubr.msk.f32.mxu0 %vm341_vm0, %v342_v1  ;;  %v56_v3 = vld [vmem:[#allocation6 + $0x8] sm:$0xff]  ;;  %v57_v4 = vld [vmem:[#allocation6 + $0x10] sm:$0xff]  ;;  %v58_v6 = vld [vmem:[#allocation6 + $0x18] sm:$0xff]  ;;  %s343_s11 = smov [#allocation8]  }
  0x28   :  { %v229_v5 = vpack.c.bf16 %v56_v3, %v55_v2  ;;  %v232_v7 = vpack.c.bf16 %v58_v6, %v57_v4  ;;  %v59_v8 = vld [vmem:[#allocation6 + $0x20] sm:$0xff]  ;;  %v60_v9 = vld [vmem:[#allocation6 + $0x28] sm:$0xff]  ;;  %v61_v11 = vld [vmem:[#allocation6 + $0x30] sm:$0xff]  ;;  %s165_s12 = sshll.u32 %s343_s11, 4  ;;  %s166_s12 = int_to_ptr.vmem [resolvable:$true] %s165_s12 }
  0x29   :  { %v235_v10 = vpack.c.bf16 %v60_v9, %v59_v8  ;;  %v62_v12 = vld [vmem:[#allocation6 + $0x38] sm:$0xff]  ;;  %v63_v14 = vld [vmem:[#allocation6 + $0x40] sm:$0xff]  ;;  %v64_v15 = vld [vmem:[#allocation6 + $0x48] sm:$0xff]  ;;  %s308_s13 = scalar_lea.vmem %s166_s12, 128  ;;  %p313_p3 = scmp.lt.s32.totalorder %s166_s12, %s166_s12 }
  0x2a   :  { %230 = vmatpush3.bf16.msra.mxu0 %v229_v5  ;;  %v238_v13 = vpack.c.bf16 %v62_v12, %v61_v11  ;;  %v241_v16 = vpack.c.bf16 %v64_v15, %v63_v14  ;;  %v65_v17 = vld [vmem:[#allocation6 + $0x50] sm:$0xff]  ;;  %v66_v18 = vld [vmem:[#allocation6 + $0x58] sm:$0xff]  ;;  %v67_v20 = vld [vmem:[#allocation6 + $0x60] sm:$0xff]  ;;  %p309_p2 = scmp.ne.s32.totalorder %s166_s12, %s308_s13  ;;  %p314_p4 = scmp.lt.s32.totalorder %s308_s13, %s308_s13 }
  0x2b   :  { %231 = vmatprep.subr.bf16.mxu0 %v340_v0  ;;  %v244_v19 = vpack.c.bf16 %v66_v18, %v65_v17  ;;  %v68_v21 = vld [vmem:[#allocation6 + $0x68] sm:$0xff]  ;;  %v69_v23 = vld [vmem:[#allocation6 + $0x70] sm:$0xff]  ;;  %v70_v24 = vld [vmem:[#allocation6 + $0x78] sm:$0xff] }
  0x2c   :  { %v247_v22 = vpack.c.bf16 %v68_v21, %v67_v20  ;;  %v250_v25 = vpack.c.bf16 %v70_v24, %v69_v23  ;;  %v72_v26 = vld [vmem:[#allocation3] sm:$0xff]  ;;  %p315_p5 = por %p314_p4, %p313_p3 }
  0x2d   :  { %v175_v27 = vld [vmem:[%s412_s2] ss:$0 sm:$0xff] }
  0x2e   :  { %233 = vmatpush3.bf16.msra.mxu0 %v232_v7  ;;  %p316_p6 = pnand %p315_p5, %p309_p2 }
  0x2f   :  { %234 = vmatprep.subr.bf16.mxu0 %v340_v0 }
  0x32   :  { %236 = vmatpush3.bf16.msra.mxu0 %v235_v10 }
  0x33   :  { %237 = vmatprep.subr.bf16.mxu0 %v340_v0 }
  0x36   :  { %239 = vmatpush3.bf16.msra.mxu0 %v238_v13 }
  0x37   :  { %240 = vmatprep.subr.bf16.mxu0 %v340_v0 }
  0x3a   :  { %242 = vmatpush3.bf16.msra.mxu0 %v241_v16 }
  0x3b   :  { %243 = vmatprep.subr.bf16.mxu0 %v340_v0 }
  0x3e   :  { %245 = vmatpush3.bf16.msra.mxu0 %v244_v19 }
  0x3f   :  { %246 = vmatprep.subr.bf16.mxu0 %v340_v0 }
  0x42   :  { %248 = vmatpush3.bf16.msra.mxu0 %v247_v22 }
  0x43   :  { %249 = vmatprep.subr.bf16.mxu0 %v340_v0 }
  0x46   :  { %251 = vmatpush3.bf16.msra.mxu0 %v250_v25 }
  0x49   :  { %226 = vmatmul.mubr.f32.vlgmr.msra.gmra.mrb[0].mxu0 %v72_v26 }
 0x11c   :  { %v139_v28 = vpop.f32.mrb[0].mxu0 }
 0x11d   :  { %v143_v29 = vadd.f32 %v175_v27, %v139_v28  ;;  %v227_v30 = vpop.f32.mrb[1].mxu0 }
 0x11f   :  { %149 = vmax.xlane.f32.xlu0 %v143_v29 }
 0x1ac   :  { %v150_v31 = vpop.xlane.xlu0 %149 }
 0x1ad   :  { %v151_v32 = vsub.f32 %v143_v29, %v150_v31 }
 0x1af   :  { %v152_v33 = vmul.f32 1.442695, %v151_v32 }
 0x1b1   :  { %260 = vpow2.f32 %v152_v33 }
 0x1bb   :  { %v261_v34 = vpop.eup %260 }
 0x1bc   :  { %154 = vadd.xlane.f32.xlu0 %v261_v34 }
 0x249   :  { %v155_v35 = vpop.xlane.xlu0 %154 }
 0x24a   :  { %262 = vrcp.f32 %v155_v35 }
 0x254   :  { %v263_v36 = vpop.eup %262 }
 0x255   :  { %v157_v37 = vmul.f32 %v263_v36, %v261_v34 }
 0x257   :  { %158 = vst [vmem:[#allocation8] sm:$0xff] %v157_v37 }
 0x258   :  { %319 = shalt.err (!%p316_p6)
}
 0x259   :  { %s320_s15 = scalar_lea.hbm %s413_s3, 128 }
 0x25a   :  { %p321_p7 = scmp.ne.s32.totalorder %s413_s3, %s320_s15  ;;  %p324_p8 = scmp.lt.u32.totalorder %s320_s15, %s413_s3 }
 0x25c   :  { %p326_p9 = pnand %p324_p8, %p321_p7 }
 0x25e   :  { %329 = shalt.err (!%p326_p9)
}
 0x25f   :  { %168 = dma.vmem_to_hbm [thread:$0]  %s166_s12, 128, %s413_s3, [#allocation5]  }
 0x260   :  { %334 = dma.done.wait [#allocation5], 128  }
 0x261   :  { %335 = vsyncadd [#allocation5], 4294967168 }
 0x262   :  { %172 = vsyncpa [#allocation4], 1 }
 0x263   :  { %173 = vsyncpa [#allocation7], 1 }
 0x264   :  { %174 = vsyncpa [#allocation5], 1 }

</bundles_post_ra>
